<compile_context>
chip_gen: v7x
topology: tpu7x:2x2x1
jax: 0.10.0
libtpu: 0.0.40
codegen_flags: <defaults>
</compile_context>

<pallas_src>
import jax
import jax.numpy as jnp
from jax.experimental import pallas as pl
from jax.experimental.pallas import tpu as pltpu

KERNEL_SET = [2, 3, 5, 6]
MAX_K = max(KERNEL_SET)


def _fused_conv_kernel(w_ref, b_ref, x_ref, o_ref):
    # w_ref : (Cout, K_dim)     packed block weight
    # b_ref : (Cout, 1)         concatenated per-branch biases (f32)
    # x_ref : (K_dim, M_BLOCK)  im2col patches, output positions on the lane axis
    # o_ref : (Cout, M_BLOCK)   lane-dense output slab
    acc = jnp.dot(w_ref[...], x_ref[...], preferred_element_type=jnp.float32)
    o_ref[...] = (acc + b_ref[...]).astype(o_ref.dtype)


def _choose_m_block(m_total, cap=2048):
    # HBM-bound GEMM: bigger lane slabs amortize the ~0.35us per-grid-step
    # overhead (512 -> ~85% of HBM roofline, 1024+ -> ~86%+).  Even at 2048 lanes
    # the double-buffered VMEM footprint is a few MB, well under the scoped limit
    # on v5e/v6e (32/128 MiB) and v7x (32/64 MiB), so one cap suits all gens.
    if m_total <= cap:
        return m_total          # single full-extent block: always legal, no padding
    return cap                  # multiple of 128; Pallas masks the tail block


def dilated_inception_pallas(x_nchw, weights, biases, compute_dtype=None):
    """weights[i]: (cout_b, cin, 1, k_i) like PyTorch Conv2d; biases[i]: (cout_b,).

    compute_dtype: optional (e.g. jnp.bfloat16) to halve the dominant read
    stream; accumulation stays f32, output keeps the input dtype.
    """
    B, Cin, H, W = x_nchw.shape
    if W < MAX_K:
        raise ValueError(f"temporal length W={W} must be >= {MAX_K}")
    T_out = W - MAX_K + 1
    cout_b = weights[0].shape[0]
    Cout = cout_b * len(KERNEL_SET)
    K_dim = MAX_K * Cin
    HT = H * T_out
    cdt = compute_dtype if compute_dtype is not None else x_nchw.dtype

    # ---- pack the block weight: (Cout, MAX_K*Cin); zero entries for unused taps.
    # im2col row index = dk*Cin + c holds x[b, c, h, t + dk]; a branch with kernel
    # k uses taps dk in [MAX_K-k, MAX_K)  (== "keep the last T_out outputs").
    w_rows = []
    for wi, k in zip(weights, KERNEL_SET):
        wb = jnp.zeros((cout_b, MAX_K, Cin), dtype=jnp.float32)
        # wi[:, :, 0, :] is (cout_b, Cin, k) -> (cout_b, k, Cin) placed at taps >= MAX_K-k
        wb = wb.at[:, MAX_K - k:, :].set(jnp.transpose(wi[:, :, 0, :], (0, 2, 1)))
        w_rows.append(wb.reshape(cout_b, K_dim))
    w_t = jnp.concatenate(w_rows, axis=0).astype(cdt)                       # (Cout, K_dim)
    b_all = jnp.concatenate(biases, axis=0)[:, None].astype(jnp.float32)    # (Cout, 1)

    # ---- im2col directly in the layout the kernel wants: NO transposes, NO pad.
    # Channel-axis concat of W-shifted NCHW slices -> (B, K_dim, H, T_out); the
    # trailing reshape merges contiguous dims (free).
    patches = jnp.concatenate(
        [x_nchw[:, :, :, dk:dk + T_out] for dk in range(MAX_K)], axis=1)
    patches = patches.reshape(B, K_dim, HT).astype(cdt)                     # (B, K_dim, HT)

    m_block = _choose_m_block(HT)
    grid = (B, pl.cdiv(HT, m_block))

    cost = pl.CostEstimate(
        flops=2 * B * Cout * K_dim * HT,
        bytes_accessed=4 * (B * K_dim * HT + B * Cout * HT + Cout * K_dim + Cout),
        transcendentals=0,
    )

    out = pl.pallas_call(
        _fused_conv_kernel,
        out_shape=jax.ShapeDtypeStruct((B, Cout, HT), x_nchw.dtype),
        grid=grid,
        in_specs=[
            pl.BlockSpec((Cout, K_dim), lambda b, i: (0, 0)),         # weight: broadcast
            pl.BlockSpec((Cout, 1), lambda b, i: (0, 0)),             # bias:   broadcast
            pl.BlockSpec((None, K_dim, m_block), lambda b, i: (b, 0, i)),   # patches
        ],
        out_specs=pl.BlockSpec((None, Cout, m_block), lambda b, i: (b, 0, i)),
        compiler_params=pltpu.CompilerParams(
            dimension_semantics=("parallel", "parallel"),
            vmem_limit_bytes=32 * 1024 * 1024,
        ),
        cost_estimate=cost,
    )(w_t, b_all, patches)

    # Free reshape back to NCHW -- no transpose needed with the per-batch layout.
    return out.reshape(B, Cout, H, T_out)


def dilated_inception_reference(x_nchw, weights, biases):
    """Plain-JAX reference mirroring the PyTorch forward."""
    outs = []
    for wi, bi in zip(weights, biases):
        y = jax.lax.conv_general_dilated(
            x_nchw, wi, window_strides=(1, 1), padding="VALID",
            dimension_numbers=("NCHW", "OIHW", "NCHW"))
        y = y + bi[None, :, None, None]
        outs.append(y)
    t_out = outs[-1].shape[-1]
    outs = [o[..., -t_out:] for o in outs]
    return jnp.concatenate(outs, axis=1)


if __name__ == "__main__":
    # Small shapes consistent with the module: NCHW input, cout divisible by 4.
    B, Cin, H, W = 2, 4, 16, 16
    Cout_total = 8
    cout_b = Cout_total // len(KERNEL_SET)

    key = jax.random.PRNGKey(0)
    kx, *kws = jax.random.split(key, 1 + 2 * len(KERNEL_SET))
    x = jax.random.normal(kx, (B, Cin, H, W), dtype=jnp.float32)

    weights, biases = [], []
    for i, k in enumerate(KERNEL_SET):
        kw, kb = kws[2 * i], kws[2 * i + 1]
        weights.append(0.1 * jax.random.normal(kw, (cout_b, Cin, 1, k), dtype=jnp.float32))
        biases.append(0.1 * jax.random.normal(kb, (cout_b,), dtype=jnp.float32))

    out = dilated_inception_pallas(x, weights, biases)
    out = jax.block_until_ready(out)

    ref = dilated_inception_reference(x, weights, biases)
    assert out.shape == (B, Cout_total, H, W - MAX_K + 1), out.shape
    assert jnp.allclose(out, ref, atol=1e-4, rtol=1e-4), "mismatch vs reference"

    print("KERNEL_OK")
</pallas_src>

<mosaic_0001>
module attributes {stable_mosaic.version = 11 : i64} {
  func.func @_fused_conv_kernel(%arg0: i32, %arg1: i32, %arg2: memref<8x24xf32, #tpu.memory_space<vmem>>, %arg3: memref<8x1xf32, #tpu.memory_space<vmem>>, %arg4: memref<1x24x176xf32, #tpu.memory_space<vmem>>, %arg5: memref<1x8x176xf32, #tpu.memory_space<vmem>>) attributes {dimension_semantics = [#tpu.dimension_semantics<parallel>, #tpu.dimension_semantics<parallel>], iteration_bounds = array<i64: 2, 1>, scalar_prefetch = 0 : i64, scratch_operands = 0 : i64, tpu.core_type = #tpu.core_type<tc>, window_params = [{pipeline_mode = #tpu.pipeline_mode<synchronous>, transform_indices = @transform_0, window_bounds = array<i64: 8, 24>}, {pipeline_mode = #tpu.pipeline_mode<synchronous>, transform_indices = @transform_1, window_bounds = array<i64: 8, 1>}, {transform_indices = @transform_2, window_bounds = array<i64: 1, 24, 176>}, {transform_indices = @transform_3, window_bounds = array<i64: 1, 8, 176>}]} {
    %c0 = arith.constant 0 : index
    %c0_0 = arith.constant 0 : index
    %0 = vector.load %arg2[%c0, %c0_0] : memref<8x24xf32, #tpu.memory_space<vmem>>, vector<8x24xf32>
    %c0_1 = arith.constant 0 : index
    %c0_2 = arith.constant 0 : index
    %c0_3 = arith.constant 0 : index
    %1 = vector.load %arg4[%c0_1, %c0_2, %c0_3] : memref<1x24x176xf32, #tpu.memory_space<vmem>>, vector<1x24x176xf32>
    %2 = vector.shape_cast %1 : vector<1x24x176xf32> to vector<24x176xf32>
    %cst = arith.constant dense<0.000000e+00> : vector<8x176xf32>
    %3 = tpu.matmul %0, %2, %cst {dimension_numbers = #tpu.dot_dimension_numbers<[1], [0], [0], [1], [0, 0, 1, 1], [], []>} : vector<8x24xf32>, vector<24x176xf32>, vector<8x176xf32> -> vector<8x176xf32>
    %c0_4 = arith.constant 0 : index
    %c0_5 = arith.constant 0 : index
    %4 = vector.load %arg3[%c0_4, %c0_5] : memref<8x1xf32, #tpu.memory_space<vmem>>, vector<8x1xf32>
    %5 = vector.broadcast %4 : vector<8x1xf32> to vector<8x176xf32>
    %6 = arith.addf %3, %5 : vector<8x176xf32>
    %c0_6 = arith.constant 0 : index
    %c0_7 = arith.constant 0 : index
    %c0_8 = arith.constant 0 : index
    %7 = vector.load %arg5[%c0_6, %c0_7, %c0_8] : memref<1x8x176xf32, #tpu.memory_space<vmem>>, vector<1x8x176xf32>
    %8 = vector.shape_cast %7 : vector<1x8x176xf32> to vector<8x176xf32>
    %9 = vector.shape_cast %6 : vector<8x176xf32> to vector<1x8x176xf32>
    tpu.vector_store %arg5[%c0_6, %c0_7, %c0_8], %9 {strides = array<i32>} : memref<1x8x176xf32, #tpu.memory_space<vmem>>, vector<1x8x176xf32>,
    return
  }
  func.func @transform_0(%arg0: i32, %arg1: i32) -> (i32, i32) {
    %c0_i32 = arith.constant 0 : i32
    %c0_i32_0 = arith.constant 0 : i32
    %c0_i32_1 = arith.constant 0 : i32
    return %c0_i32, %c0_i32_0 : i32, i32
  }
  func.func @transform_1(%arg0: i32, %arg1: i32) -> (i32, i32) {
    %c0_i32 = arith.constant 0 : i32
    %c0_i32_0 = arith.constant 0 : i32
    %c0_i32_1 = arith.constant 0 : i32
    return %c0_i32, %c0_i32_0 : i32, i32
  }
  func.func @transform_2(%arg0: i32, %arg1: i32) -> (i32, i32, i32) {
    %c0_i32 = arith.constant 0 : i32
    %c0_i32_0 = arith.constant 0 : i32
    return %arg0, %c0_i32, %arg1 : i32, i32, i32
  }
  func.func @transform_3(%arg0: i32, %arg1: i32) -> (i32, i32, i32) {
    %c0_i32 = arith.constant 0 : i32
    %c0_i32_0 = arith.constant 0 : i32
    return %arg0, %c0_i32, %arg1 : i32, i32, i32
  }
}

</mosaic_0001>

<bundles_post_ra>
// kernel: tpu_custom_call.1
= control target key start
LH: loop header
LB: loop body
LE: loop exit
PB: predicated region body
PF: predicated region fallthrough
CT: control target
= control target key end

     0   :  { %8 = vsyncpa [#allocation3], 0  ;;  %s809_s0 = inlined_call_operand.vmem [shape: f32[8,24], index: 0, kind: input, shape index: {}]   ;;  %s810_s1 = inlined_call_operand.vmem [shape: f32[8,1], index: 1, kind: input, shape index: {}]   ;;  %s811_s2 = inlined_call_operand.hbm [shape: f32[2,24,176], index: 2, kind: input, shape index: {}]   ;;  %s812_s3 = inlined_call_operand.hbm [shape: f32[2,8,176], index: 3, kind: output, shape index: {}]  }
   0x1   :  { %10 = vsyncpa [#allocation3 + $0x1], 0 }
   0x2   :  { %11 = vsyncpa [#allocation4], 0 }
   0x3   :  { %13 = vsyncpa [#allocation4 + $0x1], 0  ;;  %s629_s12 = smov 0   ;;  %s631_s13 = smov 0  }
   0x4   :  { %s633_s14 = smov 0   ;;  %s635_s15 = smov 0  }
   0x5   :  { %s637_s16 = smov 0   ;;  %s639_s17 = smov 0  }
   0x6 LB: > { %s401_s18 = sadd.s32 4294967295, %s601_s17   ;;  %s402_s19 = sadd.s32 4294967294, %s601_s17   ;;  %s601_s17 = sphi %s639_s17, %s19_s17   ;;  %s597_s16 = sphi %s637_s16, %s827_s16   ;;  %s593_s15 = sphi %s635_s15, %s826_s15   ;;  %s589_s14 = sphi %s633_s14, %s825_s14   ;;  %s585_s13 = sphi %s631_s13, %s824_s13   ;;  %s581_s12 = sphi %s629_s12, %s823_s12  }
   0x7   : > { %s31_s20 = sadd.s32 1, %s597_s16  ;;  %s82_s21 = sadd.s32 1, %s589_s14 }
   0x8   : > { %p33_p0 = scmp.ge.s32.totalorder %s31_s20, 2  ;;  %p89_p1 = scmp.ne.s32.totalorder %s589_s14, %s585_s13 }
   0x9   : > { %p90_p2 = scmp.eq.s32.totalorder %s601_s17, 0  ;;  %p95_p3 = scmp.ne.s32.totalorder %s585_s13, %s581_s12 }
   0xa   : > { %s829_s20 = smov (%p33_p0, %s31_s20), 0  ;;  %p96_p5 = scmp.eq.s32.totalorder %s401_s18, 0 }
   0xb   : > { %p670_p4 = por %p90_p2, %p89_p1  ;;  %s77_s23 = ssub.s32 %s597_s16, %s829_s20 }
   0xc   : > { %p121_p6 = scmp.eq.s32.totalorder %s401_s18, 1  ;;  %p80_p7 = scmp.eq.s32.totalorder %s77_s23, 0 }
   0xd   : > { %p676_p8 = por %p96_p5, %p95_p3  ;;  %p127_p10 = scmp.eq.s32.totalorder %s402_s19, 1 }
   0xe   : > { %p680_p9 = por %p121_p6, %p89_p1  ;;  %p434_p13 = scmp.lt.s32.totalorder %s601_s17, 2 }
   0xf   : > { %s685_s26 = scalar_select %p80_p7, %s589_s14, %s82_s21  }
  0x10   : > { %s816_s25 = scalar_select %p680_p9, 1, 0 }
  0x11   : > { %p687_p11 = por %p127_p10, %p95_p3  ;;  %s153_s28 = sand.u32 1, %s589_s14  }
  0x12   : > { %s419_s29 = smul.u32 48, %s153_s28  ;;  %p697_p0 = pnand %p434_p13, %p670_p4 }
  0x13   : > { %s817_s27 = scalar_select %p687_p11, 1, 0 }
  0x14   : > { %s420_s30 = smul.u32 768, %s597_s16  ;;  %s157_s8 = scalar_lea.vmem [#allocation2], %s419_s29 }
  0x15   : > { %s166_s9 = sshll.u32 %s157_s8, 4  ;;  %s709_s10 = scalar_lea.sflag [#allocation3], %s153_s28  ;;  %s706_s9 = int_to_ptr.vmem [resolvable:$true] %s166_s9 }
  0x16   : > { %s704_s7 = scalar_lea.hbm %s811_s2, %s420_s30  ;;  %p491_p3 = pneg %p697_p0 }
  0x17   : > { %s489_s11 = scalar_lea.hbm %s704_s7, 768  ;;  %s494_s21 = scalar_lea.hbm %s811_s2, 1536 }
  0x18   : > { %p490_p2 = scmp.ne.s32.totalorder %s704_s7, %s489_s11  ;;  %p495_p6 = scmp.lt.u32.totalorder %s704_s7, %s811_s2 }
  0x19   : > { %p496_p7 = scmp.lt.u32.totalorder %s494_s21, %s489_s11  ;;  %p498_p13 = scmp.lt.u32.totalorder %s489_s11, %s704_s7 }
  0x1a   : > { %p492_p4 = pnand %p491_p3, %p490_p2 }
  0x1b   : > { %p497_p10 = por %p496_p7, %p495_p6 }
  0x1c   : > { %p493_p5 = pneg %p492_p4 }
  0x1d   : > { %p499_p12 = por %p498_p13, %p497_p10 }
  0x1f   : > { %p500_p1 = pnand %p499_p12, %p493_p5 }
  0x21   : > { %503 = shalt.err (!%p500_p1)
}
  0x22   : > { %s504_s28 = scalar_lea.vmem %s706_s9, 768  ;;  %s603_s29 = smov [#allocation2]  }
  0x23   : > { %p505_p2 = scmp.ne.s32.totalorder %s706_s9, %s504_s28  ;;  %s509_s30 = sshll.u32 %s603_s29, 4  ;;  %s510_s30 = int_to_ptr.vmem [resolvable:$false] %s509_s30 }
  0x24   : > { %s511_s5 = scalar_lea.vmem %s510_s30, 1536  ;;  %p512_p9 = scmp.lt.s32.totalorder %s706_s9, %s510_s30 }
  0x25   : > { %p507_p4 = pnand %p505_p2, %p491_p3  ;;  %p513_p6 = scmp.lt.s32.totalorder %s511_s5, %s504_s28 }
  0x27   : > { %p508_p11 = pneg %p507_p4  ;;  %p514_p7 = por %p513_p6, %p512_p9 }
  0x29   : > { %p515_p10 = pnand %p514_p7, %p508_p11 }
  0x2b   : > { %518 = shalt.err (!%p515_p10)
}
  0x2c   : > { %s604_s6 = smov 256   ;;  %s605_s8 = smov 16  }
  0x2d   : > { %429 = dma.hbm_to_vmem [thread:$0]  (!%p697_p0), %s704_s7, 768, %s706_s9, %s709_s10, %s604_s6, %s604_s6, %s605_s8  }
  0x2e   : > { %p174_p12 = scmp.lt.s32.totalorder %s601_s17, 3  ;;  %p819_p1 = scmp.ge.s32.totalorder %s601_s17, 1 }
  0x30   : > { %p175_p3 = pnand %p819_p1, %p174_p12 }
  0x31   : > { %s741_s11 = sand.u32 (!%p175_p3), 1, %s585_s13  }
  0x32   : > { %178 = sbr.rel (%p175_p3) target bundleno = 296 (0x128), region = 32  ;;  %s181_s19 = scalar_lea.sflag (!%p175_p3), [#allocation3], %s741_s11 }
  0x33   : > { %s421_s18 = smul.u32 (!%p175_p3), 48, %s741_s11 }
  0x35   : > { %s184_s21 = scalar_lea.vmem (!%p175_p3), [#allocation2], %s421_s18 }
  0x39   : > { %572 = dma.done.wait (%p676_p8), %s181_s19, 768  }
  0x3a   : > { %574 = vsyncadd (%p676_p8), %s181_s19, 4294966528  ;;  %v606_v0 = vmov 0.0   ;;  %v607_v1 = vmov 0   ;;  %v211_v2 = vld [vmem:[%s184_s21 + $0x8] sm:$0xff]  ;;  %v213_v3 = vld [vmem:[%s184_s21 + $0x18] sm:$0xff]  ;;  %vm222_vm0 = vcmask 195584  }
  0x3b   : > { %290 = vmatprep.mubr.f32.mxu0 %v606_v0  ;;  %488 = vset.pattern.permute.xlu0 %v607_v1  ;;  %v210_v4 = vld [vmem:[%s184_s21] sm:$0xff]  ;;  %v415_v5 = vpack.c.bf16 %v213_v3, %v211_v2  ;;  %v212_v6 = vld [vmem:[%s184_s21 + $0x10] sm:$0xff]  ;;  %v215_v8 = vld [vmem:[%s184_s21 + $0x28] sm:$0xff]  ;;  %s407_s10 = sshll.u32 %s741_s11, 4  ;;  %s414_s22 = sshll.u32 %s593_s15, 8  ;;  %vm298_vm1 = vcmask 392192  }
  0x3c   : > { %v417_v7 = vpack.c.bf16 %v212_v6, %v210_v4  ;;  %v216_v9 = vld [vmem:[%s810_s1] sm:$0xff]  ;;  %s206_s23 = scalar_lea.vmem [#allocation5], %s407_s10  ;;  %s760_s5 = scalar_lea.hbm %s812_s3, %s414_s22 }
  0x3d   : > { %416 = vmatprep.subr.bf16.mxu0 %v415_v5  ;;  %219 = vperm.xlu0 %488, %v216_v9   ;;  %v214_v10 = vld [vmem:[%s184_s21 + $0x20] sm:$0xff]  ;;  %s317_s28 = sshll.u32 %s206_s23, 4  ;;  %s301_s15 = scalar_lea.sflag [#allocation4], %s741_s11  ;;  %s762_s28 = int_to_ptr.vmem [resolvable:$true] %s317_s28 }
  0x3e   : > { %418 = vmatpush1.bf16.msra.mxu0 %v417_v7  ;;  %v209_v11 = vld [vmem:[%s809_s0] sm:$0xff]  ;;  %s519_s6 = scalar_lea.vmem %s762_s28, 256  ;;  %p820_p9 = scmp.ne.s32.totalorder %s816_s25, 0 }
  0x3f   : > { %230 = vmatprep.subr.mxu0 %v215_v8  ;;  %p520_p8 = scmp.ne.s32.totalorder %s762_s28, %s519_s6  ;;  %s608_s8 = smov [#allocation5]  }
  0x40   : > { %s523_s18 = sshll.u32 %s608_s8, 4  ;;  %s524_s18 = int_to_ptr.vmem [resolvable:$false] %s523_s18 }
  0x41   : > { %p521_p11 = pnand %p520_p8, %p820_p9  ;;  %s525_s19 = scalar_lea.vmem %s524_s18, 512 }
  0x42   : > { %231 = vmatpush1.msra.mxu0 %v214_v10  ;;  %p526_p5 = scmp.lt.s32.totalorder %s762_s28, %s524_s18  ;;  %p527_p13 = scmp.lt.s32.totalorder %s525_s19, %s519_s6 }
  0x43   : > { %408 = vmatmul.mubr.msk.f32.vlgmr.msra.gmra.mrb[0].mxu0 %vm222_vm0, %v209_v11  ;;  %p522_p0 = pneg %p521_p11 }
  0x44   : > { %p528_p2 = por %p527_p13, %p526_p5 }
  0x46   : > { %p529_p4 = pnand %p528_p2, %p522_p0 }
  0xbc   : > { %v220_v12 = vpop.permute.xlu0 %219 }
 0x116   : > { %v292_v13 = vpop.f32.mrb[0].mxu0 }
 0x117   : > { %v293_v14 = vadd.f32 %v292_v13, %v220_v12  ;;  %v294_v15 = vpop.f32.mrb[1].mxu0 }
 0x118   : > { %v295_v16 = vadd.f32 %v294_v15, %v220_v12 }
 0x119   : > { %297 = vst [vmem:[%s206_s23] sm:$0xff] %v293_v14 }
 0x11a   : > { %299 = vst.msk [vmem:[%s206_s23 + $0x8] sm:$0xff] %vm298_vm1, %v295_v16 }
 0x11b   : > { %532 = shalt.err (!%p529_p4)
}
 0x11c   : > { %s533_s11 = scalar_lea.hbm %s760_s5, 256  ;;  %s537_s7 = scalar_lea.hbm %s812_s3, 512 }
 0x11d   : > { %p534_p6 = scmp.ne.s32.totalorder %s760_s5, %s533_s11  ;;  %p538_p12 = scmp.lt.u32.totalorder %s760_s5, %s812_s3 }
 0x11e   : > { %p539_p1 = scmp.lt.u32.totalorder %s537_s7, %s533_s11  ;;  %p541_p8 = scmp.lt.u32.totalorder %s533_s11, %s760_s5 }
 0x11f   : > { %p535_p7 = pnand %p534_p6, %p820_p9 }
 0x120   : > { %p540_p3 = por %p539_p1, %p538_p12 }
 0x121   : > { %p536_p10 = pneg %p535_p7 }
 0x122   : > { %p542_p11 = por %p541_p8, %p540_p3 }
 0x124   : > { %p543_p0 = pnand %p542_p11, %p536_p10 }
 0x126   : > { %546 = shalt.err (!%p543_p0)
}
 0x127   : > { %424 = dma.vmem_to_hbm [thread:$0]  (%p820_p9), %s762_s28, 256, %s760_s5, %s301_s15  }
 0x128 PF: > { %s329_s10 = sand.u32 1, %s581_s12   ;;  %p821_p5 = scmp.ne.s32.totalorder %s817_s27, 0 }
 0x129   : > { %p822_p13 = scmp.ge.s32.totalorder %s601_s17, 2  ;;  %s330_s22 = scalar_lea.sflag [#allocation4], %s329_s10 }
 0x12b   : > { %p431_p2 = pnand %p822_p13, %p821_p5 }
 0x12d   : > { %576 = dma.done.wait (!%p431_p2), %s330_s22, 256  }
 0x12e   : > { %578 = vsyncadd (!%p431_p2), %s330_s22, 4294967040  ;;  %s19_s17 = sadd.s32 1, %s601_s17   ;;  %s823_s12 = smov %s585_s13 }
 0x12f   : > { %p16_p4 = scmp.ge.s32.totalorder %s19_s17, 4   ;;  %s824_s13 = smov %s589_s14 }
 0x130   : > { %s825_s14 = smov %s685_s26  ;;  %s826_s15 = smov %s597_s16 }
 0x131   : > { %s827_s16 = smov %s829_s20  ;;  %18 = sbr.rel (!%p16_p4) target bundleno = 6 (0x6), region = 77 }
 0x138   :  { %335 = vsyncpa [#allocation3], 1 }
 0x139   :  { %337 = vsyncpa [#allocation3 + $0x1], 1 }
 0x13a   :  { %338 = vsyncpa [#allocation4], 1 }
 0x13b   :  { %340 = vsyncpa [#allocation4 + $0x1], 1 }

</bundles_post_ra>
